<compile_context>
chip_gen: v5e
topology: v5e:2x2
jax: 0.10.0
libtpu: 0.0.40
codegen_flags: <defaults>
</compile_context>

<pallas_src>
import jax
import jax.numpy as jnp
from jax.experimental import pallas as pl
from jax.experimental.pallas import tpu as pltpu

EPS = 1e-5


def _fpn_level_kernel(x_ref, lnw_ref, lnb_ref, wsq_ref, wex_ref, o_ref):
    """One (C, tT) tile of one batch element, native channel-first layout.

    x_ref : (C, tT)  input features (C on sublanes, T on lanes)
    lnw   : (C, 1)   LayerNorm scale (f32)
    lnb   : (C, 1)   LayerNorm shift (f32)
    wsq   : (H, C)   SE squeeze weight, bf16    (PyTorch layout:  h = wsq @ x)
    wex   : (C, H)   SE excitation weight, bf16 (PyTorch layout:  g = wex @ h)
    o_ref : (C, tT)  output
    """
    x = x_ref[...].astype(jnp.float32)

    # --- channel LayerNorm: reduce over C (sublane axis), f32 statistics ----
    mu = jnp.mean(x, axis=0, keepdims=True)                        # (1, tT)
    xc = x - mu
    var = jnp.mean(xc * xc, axis=0, keepdims=True)                 # (1, tT)
    xn = xc * jax.lax.rsqrt(var + EPS)
    xn = xn * lnw_ref[...] + lnb_ref[...]                          # (C,1) bcast

    # --- SE gating (per-position over channels); bf16 MXU operands ----------
    h = jnp.dot(wsq_ref[...], xn.astype(jnp.bfloat16),
                preferred_element_type=jnp.float32)                # (H, tT)
    h = jnp.maximum(h, 0.0)                                        # ReLU
    g = jnp.dot(wex_ref[...], h.astype(jnp.bfloat16),
                preferred_element_type=jnp.float32)                # (C, tT)
    g = jax.nn.sigmoid(g)

    # dropout p = 0.0 -> identity
    o_ref[...] = (xn * g).astype(o_ref.dtype)


def _choose_t_tile(T, B):
    """Lane-aligned T tile (power-of-two multiple of 128, capped at 1024).

    Shrinks the tile until B * num_T_tiles >= 4 so both v7x TensorCores get
    work; tiny levels (T < 128) use a single full-extent block.
    """
    if T < 128:
        return T
    tT = 128
    while tT * 2 <= min(T, 1024):
        tT *= 2
    while tT > 128 and B * pl.cdiv(T, tT) < 4:
        tT //= 2
    return tT


def _vmem_limit_bytes(C, tT, x_dtype):
    """Scoped-VMEM limit sized from the working set (with headroom)."""
    itemsize = jnp.dtype(x_dtype).itemsize
    io = 2 * 2 * C * tT * itemsize      # double-buffered in + out blocks
    interm = 6 * C * tT * 4             # f32 temporaries inside the kernel
    weights = 1 << 20                   # resident LN params + SE weights (tiny)
    limit = io + interm + weights + (4 << 20)
    return int(min(max(limit, 32 << 20), 48 << 20))


def fpn_level_forward(x_nct, ln_w, ln_b, w_sq, w_ex):
    """x_nct: (B, C, T) features for one pyramid level (native PyTorch layout)."""
    B, C, T = x_nct.shape
    H = w_sq.shape[0]
    tT = _choose_t_tile(T, B)
    grid = (B, pl.cdiv(T, tT))

    # Pre-cast parameters once (no per-grid-step casts inside the kernel).
    ln_w = ln_w.reshape(C, 1).astype(jnp.float32)
    ln_b = ln_b.reshape(C, 1).astype(jnp.float32)
    w_sq = w_sq.astype(jnp.bfloat16)
    w_ex = w_ex.astype(jnp.bfloat16)

    grid_spec = pltpu.PrefetchScalarGridSpec(
        num_scalar_prefetch=0,
        grid=grid,
        in_specs=[
            pl.BlockSpec((None, C, tT), lambda b, t: (b, 0, t)),   # x (batch squeezed)
            pl.BlockSpec((C, 1), lambda b, t: (0, 0)),             # LN scale (resident)
            pl.BlockSpec((C, 1), lambda b, t: (0, 0)),             # LN shift (resident)
            pl.BlockSpec((H, C), lambda b, t: (0, 0)),             # squeeze W (resident)
            pl.BlockSpec((C, H), lambda b, t: (0, 0)),             # excitation W (resident)
        ],
        out_specs=pl.BlockSpec((None, C, tT), lambda b, t: (b, 0, t)),
    )

    return pl.pallas_call(
        _fpn_level_kernel,
        out_shape=jax.ShapeDtypeStruct((B, C, T), x_nct.dtype),
        grid_spec=grid_spec,
        compiler_params=pltpu.CompilerParams(
            dimension_semantics=("parallel", "parallel"),
            vmem_limit_bytes=_vmem_limit_bytes(C, tT, x_nct.dtype)),
    )(x_nct, ln_w, ln_b, w_sq, w_ex)


def fpn_identity_forward(inputs_nct, fpn_masks, params):
    """FPNIdentity.forward.

    inputs_nct : tuple of (B, C, T_l) arrays (native PyTorch NCT layout)
    fpn_masks  : tuple of mask arrays (passed through unchanged)
    params     : per-level 'ln_w','ln_b' lists plus shared 'w_sq','w_ex'
    """
    # TODO(synk): fuse the tiny tail levels (T <= ~256) into one pallas_call via a
    # scalar-prefetch level table to amortize per-call launch latency; large levels
    # are HBM-bound and don't benefit.
    fpn_feats = ()
    new_masks = ()
    for i, x in enumerate(inputs_nct):
        y = fpn_level_forward(x, params["ln_w"][i], params["ln_b"][i],
                              params["w_sq"], params["w_ex"])
        fpn_feats += (y,)
        new_masks += (fpn_masks[i],)
    return fpn_feats, new_masks


# ----------------------------- reference (plain JAX) ------------------------
def _reference_level(x_nct, ln_w, ln_b, w_sq, w_ex):
    x = x_nct.astype(jnp.float32)                                  # (B, C, T)
    mu = jnp.mean(x, axis=1, keepdims=True)
    xc = x - mu
    var = jnp.mean(xc * xc, axis=1, keepdims=True)
    xn = xc / jnp.sqrt(var + EPS)
    xn = xn * ln_w.reshape(1, -1, 1) + ln_b.reshape(1, -1, 1)
    xp = jnp.transpose(xn, (0, 2, 1))                              # (B, T, C)
    h = jnp.maximum(jnp.einsum("btc,hc->bth", xp, w_sq.astype(jnp.float32)), 0.0)
    g = jax.nn.sigmoid(jnp.einsum("bth,ch->btc", h, w_ex.astype(jnp.float32)))
    return jnp.transpose(xp * g, (0, 2, 1))                        # (B, C, T)


if __name__ == "__main__":
    key = jax.random.PRNGKey(0)

    B = 2
    C = 32                  # out_channel == in_channels[i]
    ratio = 8               # se_enhance ratio
    H = C // ratio
    T_levels = (16, 8)      # scale_factor = 2.0 between levels

    keys = jax.random.split(key, 10)
    inputs = tuple(
        jax.random.normal(keys[i], (B, C, T_levels[i]), dtype=jnp.float32)
        for i in range(len(T_levels)))
    fpn_masks = tuple(jnp.ones((B, 1, t), dtype=jnp.bool_) for t in T_levels)

    # Deterministic synthetic parameters (shapes follow the module __init__):
    #   per-level channel-LayerNorm affine stored as (C, 1),
    #   SENet linears in PyTorch (out_features, in_features) layout.
    params = {
        "ln_w": [1.0 + 0.1 * jax.random.normal(keys[2 + i], (C, 1), jnp.float32)
                 for i in range(len(T_levels))],
        "ln_b": [0.1 * jax.random.normal(keys[4 + i], (C, 1), jnp.float32)
                 for i in range(len(T_levels))],
        "w_sq": 0.1 * jax.random.normal(keys[6], (H, C), dtype=jnp.float32),
        "w_ex": 0.1 * jax.random.normal(keys[7], (C, H), dtype=jnp.float32),
    }

    feats, masks = fpn_identity_forward(inputs, fpn_masks, params)
    feats = jax.block_until_ready(feats)

    # Correctness check against a plain-JAX f32 reference of the same math.
    # (Tolerance loosened vs. a pure-f32 kernel because the SE gate matmuls now
    #  run with bf16 operands -- expected precision change, not a bug.)
    for i, x in enumerate(inputs):
        ref = _reference_level(x, params["ln_w"][i], params["ln_b"][i],
                               params["w_sq"], params["w_ex"])
        assert feats[i].shape == x.shape
        assert jnp.allclose(feats[i].astype(jnp.float32), ref,
                            atol=2e-2, rtol=2e-2), f"level {i} mismatch"
    assert all(jnp.array_equal(m, fm) for m, fm in zip(masks, fpn_masks))

    # Multi-tile grid + ragged edge (T=384 -> tT=256, last tile half-valid), f32.
    x_big = jax.random.normal(keys[8], (B, C, 384), dtype=jnp.float32)
    y_big = jax.block_until_ready(
        fpn_level_forward(x_big, params["ln_w"][0], params["ln_b"][0],
                          params["w_sq"], params["w_ex"]))
    ref_big = _reference_level(x_big, params["ln_w"][0], params["ln_b"][0],
                               params["w_sq"], params["w_ex"])
    assert jnp.allclose(y_big, ref_big, atol=2e-2, rtol=2e-2), "tiled path mismatch"

    # bf16 HBM path with unaligned T (T=200 -> tT=128, cdiv grid, masked edge).
    x_bf16 = jax.random.normal(keys[9], (B, C, 200), dtype=jnp.float32
                               ).astype(jnp.bfloat16)
    y_bf16 = jax.block_until_ready(
        fpn_level_forward(x_bf16, params["ln_w"][0], params["ln_b"][0],
                          params["w_sq"], params["w_ex"]))
    assert y_bf16.dtype == jnp.bfloat16
    ref_bf16 = _reference_level(x_bf16, params["ln_w"][0], params["ln_b"][0],
                                params["w_sq"], params["w_ex"])
    assert jnp.allclose(y_bf16.astype(jnp.float32), ref_bf16,
                        atol=5e-2, rtol=5e-2), "bf16 path mismatch"

    print("KERNEL_OK")
</pallas_src>

<mosaic_0001>
module attributes {stable_mosaic.version = 11 : i64} {
  func.func @_fpn_level_kernel(%arg0: i32, %arg1: i32, %arg2: memref<1x32x16xf32, #tpu.memory_space<vmem>>, %arg3: memref<32x1xf32, #tpu.memory_space<vmem>>, %arg4: memref<32x1xf32, #tpu.memory_space<vmem>>, %arg5: memref<4x32xbf16, #tpu.memory_space<vmem>>, %arg6: memref<32x4xbf16, #tpu.memory_space<vmem>>, %arg7: memref<1x32x16xf32, #tpu.memory_space<vmem>>) attributes {dimension_semantics = [#tpu.dimension_semantics<parallel>, #tpu.dimension_semantics<parallel>], iteration_bounds = array<i64: 2, 1>, scalar_prefetch = 0 : i64, scratch_operands = 0 : i64, tpu.core_type = #tpu.core_type<tc>, window_params = [{transform_indices = @transform_0, window_bounds = array<i64: 1, 32, 16>}, {pipeline_mode = #tpu.pipeline_mode<synchronous>, transform_indices = @transform_1, window_bounds = array<i64: 32, 1>}, {pipeline_mode = #tpu.pipeline_mode<synchronous>, transform_indices = @transform_2, window_bounds = array<i64: 32, 1>}, {pipeline_mode = #tpu.pipeline_mode<synchronous>, transform_indices = @transform_3, window_bounds = array<i64: 4, 32>}, {pipeline_mode = #tpu.pipeline_mode<synchronous>, transform_indices = @transform_4, window_bounds = array<i64: 32, 4>}, {transform_indices = @transform_5, window_bounds = array<i64: 1, 32, 16>}]} {
    %c0 = arith.constant 0 : index
    %c0_0 = arith.constant 0 : index
    %c0_1 = arith.constant 0 : index
    %0 = vector.load %arg2[%c0, %c0_0, %c0_1] : memref<1x32x16xf32, #tpu.memory_space<vmem>>, vector<1x32x16xf32>
    %1 = vector.shape_cast %0 : vector<1x32x16xf32> to vector<32x16xf32>
    %cst = arith.constant dense<0.000000e+00> : vector<16xf32>
    %2 = vector.multi_reduction <add>, %1, %cst [0] : vector<32x16xf32> to vector<16xf32>
    %3 = vector.shape_cast %2 : vector<16xf32> to vector<1x16xf32>
    %cst_2 = arith.constant 3.200000e+01 : f32
    %4 = vector.broadcast %cst_2 : f32 to vector<1x16xf32>
    %5 = arith.divf %3, %4 : vector<1x16xf32>
    %6 = vector.broadcast %5 : vector<1x16xf32> to vector<32x16xf32>
    %7 = arith.subf %1, %6 : vector<32x16xf32>
    %8 = arith.mulf %7, %7 : vector<32x16xf32>
    %cst_3 = arith.constant dense<0.000000e+00> : vector<16xf32>
    %9 = vector.multi_reduction <add>, %8, %cst_3 [0] : vector<32x16xf32> to vector<16xf32>
    %10 = vector.shape_cast %9 : vector<16xf32> to vector<1x16xf32>
    %cst_4 = arith.constant 3.200000e+01 : f32
    %11 = vector.broadcast %cst_4 : f32 to vector<1x16xf32>
    %12 = arith.divf %10, %11 : vector<1x16xf32>
    %cst_5 = arith.constant 9.99999974E-6 : f32
    %13 = vector.broadcast %cst_5 : f32 to vector<1x16xf32>
    %14 = arith.addf %12, %13 : vector<1x16xf32>
    %15 = math.rsqrt %14 : vector<1x16xf32>
    %16 = vector.broadcast %15 : vector<1x16xf32> to vector<32x16xf32>
    %17 = arith.mulf %7, %16 : vector<32x16xf32>
    %c0_6 = arith.constant 0 : index
    %c0_7 = arith.constant 0 : index
    %18 = vector.load %arg3[%c0_6, %c0_7] : memref<32x1xf32, #tpu.memory_space<vmem>>, vector<32x1xf32>
    %19 = vector.broadcast %18 : vector<32x1xf32> to vector<32x16xf32>
    %20 = arith.mulf %17, %19 : vector<32x16xf32>
    %c0_8 = arith.constant 0 : index
    %c0_9 = arith.constant 0 : index
    %21 = vector.load %arg4[%c0_8, %c0_9] : memref<32x1xf32, #tpu.memory_space<vmem>>, vector<32x1xf32>
    %22 = vector.broadcast %21 : vector<32x1xf32> to vector<32x16xf32>
    %23 = arith.addf %20, %22 : vector<32x16xf32>
    %c0_10 = arith.constant 0 : index
    %c0_11 = arith.constant 0 : index
    %24 = vector.load %arg5[%c0_10, %c0_11] : memref<4x32xbf16, #tpu.memory_space<vmem>>, vector<4x32xbf16>
    %25 = arith.truncf %23 : vector<32x16xf32> to vector<32x16xbf16>
    %cst_12 = arith.constant dense<0.000000e+00> : vector<4x16xf32>
    %26 = tpu.matmul %24, %25, %cst_12 {dimension_numbers = #tpu.dot_dimension_numbers<[1], [0], [0], [1], [0, 0, 1, 1], [], []>} : vector<4x32xbf16>, vector<32x16xbf16>, vector<4x16xf32> -> vector<4x16xf32>
    %cst_13 = arith.constant 0.000000e+00 : f32
    %27 = vector.broadcast %cst_13 : f32 to vector<4x16xf32>
    %28 = arith.maximumf %26, %27 : vector<4x16xf32>
    %c0_14 = arith.constant 0 : index
    %c0_15 = arith.constant 0 : index
    %29 = vector.load %arg6[%c0_14, %c0_15] : memref<32x4xbf16, #tpu.memory_space<vmem>>, vector<32x4xbf16>
    %30 = arith.truncf %28 : vector<4x16xf32> to vector<4x16xbf16>
    %cst_16 = arith.constant dense<0.000000e+00> : vector<32x16xf32>
    %31 = tpu.matmul %29, %30, %cst_16 {dimension_numbers = #tpu.dot_dimension_numbers<[1], [0], [0], [1], [0, 0, 1, 1], [], []>} : vector<32x4xbf16>, vector<4x16xbf16>, vector<32x16xf32> -> vector<32x16xf32>
    %32 = arith.negf %31 : vector<32x16xf32>
    %33 = math.exp %32 : vector<32x16xf32>
    %cst_17 = arith.constant 1.000000e+00 : f32
    %34 = vector.broadcast %cst_17 : f32 to vector<32x16xf32>
    %35 = arith.addf %34, %33 : vector<32x16xf32>
    %36 = arith.divf %34, %35 : vector<32x16xf32>
    %37 = arith.mulf %23, %36 : vector<32x16xf32>
    %c0_18 = arith.constant 0 : index
    %c0_19 = arith.constant 0 : index
    %c0_20 = arith.constant 0 : index
    %38 = vector.load %arg7[%c0_18, %c0_19, %c0_20] : memref<1x32x16xf32, #tpu.memory_space<vmem>>, vector<1x32x16xf32>
    %39 = vector.shape_cast %38 : vector<1x32x16xf32> to vector<32x16xf32>
    %40 = vector.shape_cast %37 : vector<32x16xf32> to vector<1x32x16xf32>
    tpu.vector_store %arg7[%c0_18, %c0_19, %c0_20], %40 {strides = array<i32>} : memref<1x32x16xf32, #tpu.memory_space<vmem>>, vector<1x32x16xf32>,
    return
  }
  func.func @transform_0(%arg0: i32, %arg1: i32) -> (i32, i32, i32) {
    %c0_i32 = arith.constant 0 : i32
    %c0_i32_0 = arith.constant 0 : i32
    return %arg0, %c0_i32, %arg1 : i32, i32, i32
  }
  func.func @transform_1(%arg0: i32, %arg1: i32) -> (i32, i32) {
    %c0_i32 = arith.constant 0 : i32
    %c0_i32_0 = arith.constant 0 : i32
    %c0_i32_1 = arith.constant 0 : i32
    return %c0_i32, %c0_i32_0 : i32, i32
  }
  func.func @transform_2(%arg0: i32, %arg1: i32) -> (i32, i32) {
    %c0_i32 = arith.constant 0 : i32
    %c0_i32_0 = arith.constant 0 : i32
    %c0_i32_1 = arith.constant 0 : i32
    return %c0_i32, %c0_i32_0 : i32, i32
  }
  func.func @transform_3(%arg0: i32, %arg1: i32) -> (i32, i32) {
    %c0_i32 = arith.constant 0 : i32
    %c0_i32_0 = arith.constant 0 : i32
    %c0_i32_1 = arith.constant 0 : i32
    return %c0_i32, %c0_i32_0 : i32, i32
  }
  func.func @transform_4(%arg0: i32, %arg1: i32) -> (i32, i32) {
    %c0_i32 = arith.constant 0 : i32
    %c0_i32_0 = arith.constant 0 : i32
    %c0_i32_1 = arith.constant 0 : i32
    return %c0_i32, %c0_i32_0 : i32, i32
  }
  func.func @transform_5(%arg0: i32, %arg1: i32) -> (i32, i32, i32) {
    %c0_i32 = arith.constant 0 : i32
    %c0_i32_0 = arith.constant 0 : i32
    return %arg0, %c0_i32, %arg1 : i32, i32, i32
  }
}

</mosaic_0001>

<bundles_post_ra>
// kernel: tpu_custom_call.1
= control target key start
LH: loop header
LB: loop body
LE: loop exit
PB: predicated region body
PF: predicated region fallthrough
CT: control target
= control target key end

     0   :  { %s745_s18 = smov 0   ;;  %s747_s19 = smov 0   ;;  %s852_s0 = inlined_call_operand.vmem [shape: f32[2,32,16], index: 0, kind: input, shape index: {}]   ;;  %s853_s1 = inlined_call_operand.vmem [shape: f32[32,1], index: 1, kind: input, shape index: {}]   ;;  %s854_s2 = inlined_call_operand.vmem [shape: f32[32,1], index: 2, kind: input, shape index: {}]   ;;  %s855_s3 = inlined_call_operand.vmem [shape: bf16[4,32], index: 3, kind: input, shape index: {}]   ;;  %s856_s4 = inlined_call_operand.vmem [shape: bf16[32,4], index: 4, kind: input, shape index: {}]   ;;  %s857_s5 = inlined_call_operand.vmem [shape: f32[2,32,16], index: 5, kind: output, shape index: {}]  }
   0x1   :  { %s749_s20 = smov 0  }
   0x2 LB: > { %s27_s21 = sadd.s32 1, %s707_s19  ;;  %p613_p0 = scmp.ge.s32.totalorder %s711_s20, 1  ;;  %s711_s20 = sphi %s749_s20, %s15_s20   ;;  %s707_s19 = sphi %s747_s19, %s859_s19   ;;  %s703_s18 = sphi %s745_s18, %s858_s18  }
   0x3   : > { %p29_p1 = scmp.ge.s32.totalorder %s27_s21, 2  ;;  %p206_p2 = scmp.lt.s32.totalorder %s711_s20, 3 }
   0x5   : > { %s861_s21 = smov (%p29_p1, %s27_s21), 0  ;;  %p207_p3 = pnand %p613_p0, %p206_p2 }
   0x6   : > { %p240_p4 = scmp.lt.s32.totalorder (!%p207_p3), %s703_s18, 1 }
   0x7   : > { %210 = sbr.rel (%p207_p3) target bundleno = 457 (0x1c9), region = 40 }
   0xc   : > { %v350_v0 = vld [vmem:[%s854_s2 + $0x10] sm:$0xff]  ;;  %v713_v2 = vmov 0   ;;  %v320_v3 = vld [vmem:[%s853_s1] sm:$0xff]  ;;  %s863_s18 = smov (!%p240_p4, %s703_s18), 1  ;;  %v351_v4 = vld [vmem:[%s854_s2 + $0x18] sm:$0xff]  ;;  %vm261_vm0 = vcmask 130048  }
   0xd   : > { %v322_v1 = vld [vmem:[%s853_s1 + $0x10] sm:$0xff]  ;;  %667 = vset.pattern.permute.xlu1 %v713_v2  ;;  %666 = vset.pattern.permute.xlu0 %v713_v2  ;;  %v323_v5 = vld [vmem:[%s853_s1 + $0x18] sm:$0xff]  ;;  %v321_v6 = vld [vmem:[%s853_s1 + $0x8] sm:$0xff]  ;;  %s635_s9 = sshll.u32 %s863_s18, 5  ;;  %v714_v18 = vmov 32.0   ;;  %vm379_vm5 = vcmask 261120  }
   0xe   : > { %364 = vperm.xlu1 %667, %v350_v0   ;;  %336 = vperm.xlu0 %666, %v322_v1   ;;  %s247_s12 = scalar_lea.vmem %s852_s0, %s635_s9  ;;  %v349_v7 = vld [vmem:[%s854_s2 + $0x8] sm:$0xff]  ;;  %v348_v8 = vld [vmem:[%s854_s2] sm:$0xff]  ;;  %669 = vrcp.f32 %v714_v18  ;;  %vm419_vm6 = vcmask 1041408   ;;  %vm412_vm7 = vcmask 31744   ;;  %s829_s29 = scalar_lea.vmem %s857_s5, %s635_s9 }
   0xf   : > { %668 = vset.pattern.permute.xlu2 %v713_v2  ;;  %v257_v9 = vld [vmem:[%s247_s12] sm:$0xff]  ;;  %v258_v10 = vld [vmem:[%s247_s12 + $0x8] sm:$0xff]  ;;  %v259_v13 = vld [vmem:[%s247_s12 + $0x10] sm:$0xff] }
  0x10   : > { %326 = vperm.xlu2 %668, %v320_v3   ;;  %v262_v11 = vsel %vm261_vm0, %v257_v9, 0.0  ;;  %v263_v12 = vsel %vm261_vm0, %v258_v10, 0.0  ;;  %v265_v15 = vsel %vm261_vm0, %v259_v13, 0.0  ;;  %v260_v16 = vld [vmem:[%s247_s12 + $0x18] sm:$0xff] }
  0x11   : > { %v264_v14 = vadd.f32 %v263_v12, %v262_v11  ;;  %v267_v19 = vsel %vm261_vm0, %v260_v16, 0.0 }
  0x13   : > { %v266_v17 = vadd.f32 %v265_v15, %v264_v14 }
  0x14   : > { %v670_v22 = vpop.eup %669 }
  0x15   : > { %v268_v20 = vadd.f32 %v267_v19, %v266_v17  ;;  %v276_v24 = vmul.f32 32.0, %v670_v22  ;;  %vm280_vm1 = vweird.f32 %v670_v22 }
  0x16   : > { %369 = vperm.xlu1 %667, %v351_v4   ;;  %341 = vperm.xlu0 %666, %v323_v5  }
  0x17   : > { %v269_v21 = vrot.slane %v268_v20, 4  ;;  %v277_v26 = vsub.f32 1.0, %v276_v24 }
  0x18   : > { %331 = vperm.xlu2 %668, %v321_v6  }
  0x19   : > { %v270_v23 = vadd.f32 %v269_v21, %v268_v20  ;;  %v278_v28 = vmul.f32 %v670_v22, %v277_v26 }
  0x1b   : > { %v271_v25 = vrot.slane %v270_v23, 2  ;;  %v279_v30 = vadd.f32 %v670_v22, %v278_v28  ;;  %v638_v28 = vld [vmem:[%s856_s4 + $0x8] sm:$0xff] }
  0x1d   : > { %v272_v27 = vadd.f32 %v271_v25, %v270_v23  ;;  %v281_v32 = vsel %vm280_vm1, %v670_v22, %v279_v30  ;;  %v376_v22 = vld [vmem:[%s855_s3] sm:$0x3] }
  0x1e   : > { %359 = vperm.xlu1 %667, %v349_v7   ;;  %354 = vperm.xlu0 %666, %v348_v8  }
  0x1f   : > { %v273_v29 = vrot.slane %v272_v27, 1 }
  0x21   : > { %v274_v31 = vadd.f32 %v273_v29, %v272_v27  ;;  %v637_v27 = vld [vmem:[%s856_s4] sm:$0xff] }
  0x23   : > { %v282_v33 = vmul.f32 %v281_v32, %v274_v31 }
  0x25   : > { %v283_v34 = vsub.f32 %v257_v9, %v282_v33  ;;  %v284_v35 = vsub.f32 %v258_v10, %v282_v33  ;;  %v285_v36 = vsub.f32 %v259_v13, %v282_v33  ;;  %v286_v39 = vsub.f32 %v260_v16, %v282_v33 }
  0x27   : > { %v287_v37 = vmul.f32 %v283_v34, %v283_v34  ;;  %v288_v38 = vmul.f32 %v284_v35, %v284_v35  ;;  %v289_v40 = vmul.f32 %v285_v36, %v285_v36  ;;  %v290_v44 = vmul.f32 %v286_v39, %v286_v39 }
  0x29   : > { %v291_v41 = vsel %vm261_vm0, %v287_v37, 0.0  ;;  %v292_v42 = vsel %vm261_vm0, %v288_v38, 0.0  ;;  %v294_v45 = vsel %vm261_vm0, %v289_v40, 0.0  ;;  %v296_v47 = vsel %vm261_vm0, %v290_v44, 0.0 }
  0x2a   : > { %v293_v43 = vadd.f32 %v292_v42, %v291_v41 }
  0x2c   : > { %v295_v46 = vadd.f32 %v294_v45, %v293_v43 }
  0x2e   : > { %v297_v48 = vadd.f32 %v296_v47, %v295_v46 }
  0x30   : > { %v298_v49 = vrot.slane %v297_v48, 4 }
  0x32   : > { %v299_v50 = vadd.f32 %v298_v49, %v297_v48 }
  0x34   : > { %v300_v51 = vrot.slane %v299_v50, 2 }
  0x36   : > { %v301_v52 = vadd.f32 %v300_v51, %v299_v50 }
  0x38   : > { %v302_v53 = vrot.slane %v301_v52, 1 }
  0x3a   : > { %v303_v54 = vadd.f32 %v302_v53, %v301_v52 }
  0x3c   : > { %v304_v55 = vmul.f32 %v303_v54, %v281_v32 }
  0x3e   : > { %v305_v56 = vadd.f32 1e-05, %v304_v55 }
  0x40   : > { %671 = vrsqrt.f32 %v305_v56  ;;  %vm312_vm2 = vweird.f32 %v305_v56 }
  0x46   : > { %v672_v57 = vpop.eup %671 }
  0x47   : > { %v307_v58 = vmul.f32 %v672_v57, %v305_v56  ;;  %vm313_vm3 = vweird.f32 %v672_v57 }
  0x48   : > { %vm314_vm4 = vmor %vm312_vm2, %vm313_vm3 }
  0x49   : > { %v308_v59 = vmul.f32 %v672_v57, %v307_v58 }
  0x4b   : > { %v309_v60 = vmul.f32 0.5, %v308_v59 }
  0x4d   : > { %v310_v61 = vsub.f32 1.5, %v309_v60 }
  0x4f   : > { %v311_v62 = vmul.f32 %v672_v57, %v310_v61 }
  0x51   : > { %v315_v63 = vsel %vm314_vm4, %v672_v57, %v311_v62 }
  0x52   : > { %v318_v3 = vmul.f32 %v315_v63, %v285_v36  ;;  %v319_v4 = vmul.f32 %v315_v63, %v286_v39  ;;  %v316_v9 = vmul.f32 %v315_v63, %v283_v34  ;;  %v317_v10 = vmul.f32 %v315_v63, %v284_v35 }
  0x6a   : > { %v327_v2 = vpop.permute.xlu2 %326 }
  0x6b   : > { %v344_v15 = vmul.f32 %v327_v2, %v316_v9 }
  0x72   : > { %v332_v13 = vpop.permute.xlu2 %331 }
  0x73   : > { %v345_v16 = vmul.f32 %v332_v13, %v317_v10 }
  0x80   : > { %v365_v0 = vpop.permute.xlu1 %364  ;;  %v337_v1 = vpop.permute.xlu0 %336 }
  0x81   : > { %v346_v5 = vmul.f32 %v337_v1, %v318_v3 }
  0x83   : > { %v803_v11 = vadd.f32 %v365_v0, %v346_v5 }
  0x88   : > { %v370_v6 = vpop.permute.xlu1 %369  ;;  %v342_v7 = vpop.permute.xlu0 %341 }
  0x89   : > { %v347_v8 = vmul.f32 %v342_v7, %v319_v4 }
  0x8b   : > { %v805_v12 = vadd.f32 %v370_v6, %v347_v8 }
  0x8d   : > { %v378_v14 = vpack.c.bf16 %v805_v12, %v803_v11 }
  0x8f   : > { %389 = vmatpush.bf16.msra.mxu0 %v378_v14 }
  0x90   : > { %v360_v17 = vpop.permute.xlu1 %359  ;;  %v355_v18 = vpop.permute.xlu0 %354 }
  0x91   : > { %v809_v19 = vadd.f32 %v360_v17, %v345_v16  ;;  %v811_v20 = vadd.f32 %v355_v18, %v344_v15 }
  0x93   : > { %v377_v21 = vpack.c.bf16 %v809_v19, %v811_v20 }
  0x95   : > { %390 = vmatpush.bf16.msra.mxu0 %v377_v21 }
  0x98   : > { %618 = vmatmul.msk.bf16.vlgmr.msra.gmra.mxu0 %vm379_vm5, %v376_v22 }
 0x115   : > { %v392_v23 = vpop.f32.mrf.mxu0 }
 0x116   : > { %v396_v24 = vmax.f32 %v392_v23, 0.0 }
 0x118   : > { %v401_v25 = vpack.c.bf16 %v396_v24, %v396_v24 }
 0x11a   : > { %v421_v26 = vsel %vm419_vm6, %v401_v25, 0 }
 0x11b   : > { %430 = vmatpush.bf16.msra.mxu1 %v421_v26  ;;  %639 = vmatpush.bf16.msra.mxu2 %v421_v26 }
 0x11d   : > { %v394_v29 = vpop.f32.mrf.mxu0 }
 0x11e   : > { %627 = vmatmul.msk.bf16.vlgmr.msra.gmra.mxu1 %vm412_vm7, %v637_v27  ;;  %628 = vmatmul.msk.bf16.vlgmr.msra.gmra.mxu2 %vm412_vm7, %v638_v28 }
 0x19b   : > { %v432_v30 = vpop.f32.mrf.mxu1 }
 0x19c   : > { %v629_v31 = vmul.f32 -1.442695, %v432_v30 }
 0x19e   : > { %673 = vpow2.f32 %v629_v31 }
 0x1a1   : > { %v437_v32 = vpop.f32.mrf.mxu2 }
 0x1a2   : > { %v631_v33 = vmul.f32 -1.442695, %v437_v32 }
 0x1a3   : > { %v434_v34 = vpop.f32.mrf.mxu1 }
 0x1a4   : > { %v674_v35 = vpop.eup %673  ;;  %675 = vpow2.f32 %v631_v33  ;;  %v630_v36 = vmul.f32 -1.442695, %v434_v34 }
 0x1a5   : > { %v454_v37 = vadd.f32 1.0, %v674_v35 }
 0x1a6   : > { %677 = vpow2.f32 %v630_v36 }
 0x1a7   : > { %679 = vrcp.f32 %v454_v37  ;;  %v469_v47 = vand.u32 2147483648, %v454_v37  ;;  %vm463_vm8 = vweird.f32 %v454_v37  ;;  %v467_v50 = vand.u32 2147483647, %v454_v37 }
 0x1a9   : > { %v439_v38 = vpop.f32.mrf.mxu2  ;;  %v470_v55 = vor.u32 1.1754944e-38, %v469_v47  ;;  %vm468_vm11 = vcmp.eq.f32.partialorder %v467_v50, 8.507059e+37 }
 0x1aa   : > { %v676_v39 = vpop.eup %675  ;;  %v632_v40 = vmul.f32 -1.442695, %v439_v38 }
 0x1ab   : > { %v456_v41 = vadd.f32 1.0, %v676_v39 }
 0x1ac   : > { %v678_v42 = vpop.eup %677  ;;  %681 = vpow2.f32 %v632_v40 }
 0x1ad   : > { %v680_v43 = vpop.eup %679  ;;  %683 = vrcp.f32 %v456_v41  ;;  %v455_v45 = vadd.f32 1.0, %v678_v42  ;;  %v499_v60 = vand.u32 2147483648, %v456_v41  ;;  %v497_v0 = vand.u32 2147483647, %v456_v41 }
 0x1ae   : > { %v459_v44 = vmul.f32 %v680_v43, %v454_v37  ;;  %vm464_vm9 = vweird.f32 %v680_v43  ;;  %vm493_vm13 = vweird.f32 %v456_v41 }
 0x1af   : > { %685 = vrcp.f32 %v455_v45  ;;  %vm465_vm10 = vmor %vm463_vm8, %vm464_vm9  ;;  %v484_v3 = vand.u32 2147483648, %v455_v45  ;;  %v500_v5 = vor.u32 1.1754944e-38, %v499_v60  ;;  %v482_v7 = vand.u32 2147483647, %v455_v45 }
 0x1b0   : > { %v460_v46 = vsub.f32 1.0, %v459_v44  ;;  %vm498_vm1 = vcmp.eq.f32.partialorder %v497_v0, 8.507059e+37  ;;  %vm478_vm2 = vweird.f32 %v455_v45 }
 0x1b1   : > { %v485_v15 = vor.u32 1.1754944e-38, %v484_v3  ;;  %vm483_vm4 = vcmp.eq.f32.partialorder %v482_v7, 8.507059e+37 }
 0x1b2   : > { %v682_v48 = vpop.eup %681  ;;  %v461_v49 = vmul.f32 %v680_v43, %v460_v46 }
 0x1b3   : > { %v684_v51 = vpop.eup %683  ;;  %v457_v52 = vadd.f32 1.0, %v682_v48 }
 0x1b4   : > { %v462_v53 = vadd.f32 %v680_v43, %v461_v49  ;;  %v489_v54 = vmul.f32 %v684_v51, %v456_v41  ;;  %vm494_vm12 = vweird.f32 %v684_v51 }
 0x1b5   : > { %687 = vrcp.f32 %v457_v52  ;;  %v686_v56 = vpop.eup %685  ;;  %vm495_vm14 = vmor %vm493_vm13, %vm494_vm12  ;;  %v514_v18 = vand.u32 2147483648, %v457_v52  ;;  %v512_v22 = vand.u32 2147483647, %v457_v52  ;;  %vm508_vm6 = vweird.f32 %v457_v52 }
 0x1b6   : > { %v466_v57 = vsel %vm465_vm10, %v680_v43, %v462_v53  ;;  %v490_v58 = vsub.f32 1.0, %v489_v54  ;;  %v474_v61 = vmul.f32 %v686_v56, %v455_v45  ;;  %vm479_vm15 = vweird.f32 %v686_v56 }
 0x1b7   : > { %v471_v59 = vsel %vm468_vm11, %v470_v55, %v466_v57  ;;  %vm480_vm3 = vmor %vm478_vm2, %vm479_vm15  ;;  %vm513_vm8 = vcmp.eq.f32.partialorder %v512_v22, 8.507059e+37 }
 0x1b8   : > { %v518_v62 = vmul.f32 %v471_v59, %v811_v20  ;;  %v491_v63 = vmul.f32 %v684_v51, %v490_v58  ;;  %v475_v1 = vsub.f32 1.0, %v474_v61 }
 0x1ba   : > { %522 = vst.msk [vmem:[%s829_s29] sm:$0xff] %vm261_vm0, %v518_v62  ;;  %v492_v2 = vadd.f32 %v684_v51, %v491_v63  ;;  %v476_v6 = vmul.f32 %v686_v56, %v475_v1 }
 0x1bb   : > { %v688_v4 = vpop.eup %687 }
 0x1bc   : > { %v496_v8 = vsel %vm495_vm14, %v684_v51, %v492_v2  ;;  %v504_v9 = vmul.f32 %v688_v4, %v457_v52  ;;  %v477_v13 = vadd.f32 %v686_v56, %v476_v6  ;;  %vm509_vm5 = vweird.f32 %v688_v4 }
 0x1bd   : > { %v501_v10 = vsel %vm498_vm1, %v500_v5, %v496_v8  ;;  %vm510_vm7 = vmor %vm508_vm6, %vm509_vm5 }
 0x1be   : > { %v520_v14 = vmul.f32 %v501_v10, %v803_v11  ;;  %v505_v16 = vsub.f32 1.0, %v504_v9  ;;  %v481_v17 = vsel %vm480_vm3, %v686_v56, %v477_v13  ;;  %v515_v11 = vor.u32 1.1754944e-38, %v514_v18 }
 0x1bf   : > { %v486_v20 = vsel %vm483_vm4, %v485_v15, %v481_v17 }
 0x1c0   : > { %524 = vst.msk [vmem:[%s829_s29 + $0x10] sm:$0xff] %vm261_vm0, %v520_v14  ;;  %v506_v21 = vmul.f32 %v688_v4, %v505_v16  ;;  %v519_v23 = vmul.f32 %v486_v20, %v809_v19 }
 0x1c2   : > { %v507_v24 = vadd.f32 %v688_v4, %v506_v21  ;;  %523 = vst.msk [vmem:[%s829_s29 + $0x8] sm:$0xff] %vm261_vm0, %v519_v23 }
 0x1c4   : > { %v511_v25 = vsel %vm510_vm7, %v688_v4, %v507_v24 }
 0x1c5   : > { %v516_v26 = vsel %vm513_vm8, %v515_v11, %v511_v25 }
 0x1c6   : > { %v521_v27 = vmul.f32 %v516_v26, %v805_v12 }
 0x1c8   : > { %525 = vst.msk [vmem:[%s829_s29 + $0x18] sm:$0xff] %vm261_vm0, %v521_v27 }
 0x1c9 PF: > { %s15_s20 = sadd.s32 1, %s711_s20   ;;  %s858_s18 = smov %s707_s19 }
 0x1ca   : > { %p12_p5 = scmp.ge.s32.totalorder %s15_s20, 4   ;;  %s859_s19 = smov %s861_s21 }
 0x1cc   :  { %14 = sbr.rel (!%p12_p5) target bundleno = 2 (0x2), region = 70 }

</bundles_post_ra>
